<compile_context>
chip_gen: v7x
topology: tpu7x:2x2x1
jax: 0.10.0
libtpu: 0.0.40
codegen_flags: <defaults>
</compile_context>

<pallas_src>
import functools
import jax
import jax.numpy as jnp
from jax.experimental import pallas as pl
from jax.experimental.pallas import tpu as pltpu


def cross_modal_kernel(x_ref, g_ref, b_ref, wqkv_ref, wo_ref, hmask_ref, bias_ref,
                       out_ref, *, n_text, n_vis, hidden, num_heads, eps):
    # x_ref: (n_text + n_vis, H) f32 -- rows [0, n_text) are the flattened text tokens,
    #                                   rows [n_text, n_text + n_vis) are the flattened vision tokens.
    x = x_ref[...]

    # --- fused LayerNorm over the stacked slab (per-row gamma/beta pick text vs vision params) ---
    mu = jnp.mean(x, axis=-1, keepdims=True)
    ex2 = jnp.mean(x * x, axis=-1, keepdims=True)
    var = ex2 - mu * mu
    xn = ((x - mu) * jax.lax.rsqrt(var + eps) * g_ref[...] + b_ref[...]).astype(jnp.bfloat16)

    # --- fused q/k/v projection: one (R, H) @ (H, 3H) MXU op, one f32->bf16 cast ---
    proj = jnp.dot(xn, wqkv_ref[...],
                   preferred_element_type=jnp.float32).astype(jnp.bfloat16)     # (R, 3H)
    q = proj[:n_text, 0:hidden]                 # (n_text, H)  text rows,   W_q (scale folded) cols
    k = proj[n_text:, hidden:2 * hidden]        # (n_vis,  H)  vision rows, W_k cols
    v = proj[n_text:, 2 * hidden:3 * hidden]    # (n_vis,  H)  vision rows, W_v cols

    # --- pack heads along sublanes: row (h*n_text + t) of q_blk = q[t] masked to head-h dims ---
    hmask = hmask_ref[...]                                                       # (NH*n_text, H) 0/1 f32
    q_blk = jnp.concatenate([q] * num_heads, axis=0) * hmask.astype(jnp.bfloat16)

    # --- all-head scores in one matmul, one plain last-axis softmax (no segmentation) ---
    s = jnp.einsum('rc,sc->rs', q_blk, k,
                   preferred_element_type=jnp.float32)                           # (NH*n_text, n_vis) f32
    s = s + bias_ref[...]            # 0 where (same batch AND unmasked vision token), else -1e30
    m = jnp.max(s, axis=-1, keepdims=True)
    p = jnp.exp(s - m)
    denom = jnp.sum(p, axis=-1, keepdims=True)
    p = (p * pl.reciprocal(denom, approx=True)).astype(jnp.bfloat16)

    # --- all-head context in one matmul; keep head-h columns of row-block h, fold row blocks ---
    c_sub = jnp.dot(p, v, preferred_element_type=jnp.float32) * hmask            # (NH*n_text, H) f32
    ctx = c_sub[0:n_text]
    for h in range(1, num_heads):                                                # disjoint column support
        ctx = ctx + c_sub[h * n_text:(h + 1) * n_text]

    attn_out = jnp.dot(ctx.astype(jnp.bfloat16), wo_ref[...],
                       preferred_element_type=jnp.float32)                       # (n_text, H) f32

    # Residual with the ORIGINAL (un-normalized) text hidden states.
    out_ref[...] = x[:n_text] + attn_out


def cross_modal_attention(text, vision, vision_mask,
                          wq, wk, wv, wo, gt, bt, gv, bv,
                          *, num_heads, eps=1e-5):
    B, T, H = text.shape
    _, V, _ = vision.shape
    head_dim = H // num_heads
    scale = head_dim ** -0.5
    n_text, n_vis = B * T, B * V
    R = n_text + n_vis

    # Stacked activations: flattened text rows first, flattened vision rows after.
    x_all = jnp.concatenate([text.reshape(n_text, H),
                             vision.reshape(n_vis, H)], axis=0).astype(jnp.float32)

    # Per-row LayerNorm params (text params on text rows, vision params on vision rows).
    g_all = jnp.concatenate([jnp.broadcast_to(gt.reshape(1, H), (n_text, H)),
                             jnp.broadcast_to(gv.reshape(1, H), (n_vis, H))],
                            axis=0).astype(jnp.float32)
    b_all = jnp.concatenate([jnp.broadcast_to(bt.reshape(1, H), (n_text, H)),
                             jnp.broadcast_to(bv.reshape(1, H), (n_vis, H))],
                            axis=0).astype(jnp.float32)

    # Fused projection weight, (in, out) layout = [W_q^T * scale | W_k^T | W_v^T], bf16.
    wqkv = jnp.concatenate([wq.T * scale, wk.T, wv.T], axis=1).astype(jnp.bfloat16)   # (H, 3H)
    wo_t = wo.T.astype(jnp.bfloat16)                                                  # (H, H)

    # Head mask: row block h (n_text rows) has ones over head-h feature columns.
    col_head = jnp.arange(H, dtype=jnp.int32) // head_dim                             # (H,)
    row_head = jnp.repeat(jnp.arange(num_heads, dtype=jnp.int32), n_text)             # (NH*n_text,)
    head_mask = (row_head[:, None] == col_head[None, :]).astype(jnp.float32)          # (NH*n_text, H)

    # Additive bias: 0 where (same batch AND vision token unmasked), else -1e30 (finite -> no NaN),
    # tiled over the head row-blocks.
    row_batch = jnp.repeat(jnp.arange(B, dtype=jnp.int32), T)                         # (n_text,)
    col_batch = jnp.repeat(jnp.arange(B, dtype=jnp.int32), V)                         # (n_vis,)
    attend = (row_batch[:, None] == col_batch[None, :]) & (vision_mask.reshape(-1) > 0)[None, :]
    bias = jnp.where(attend, 0.0, -1e30).astype(jnp.float32)                          # (n_text, n_vis)
    bias = jnp.tile(bias, (num_heads, 1))                                             # (NH*n_text, n_vis)

    kernel = functools.partial(cross_modal_kernel, n_text=n_text, n_vis=n_vis,
                               hidden=H, num_heads=num_heads, eps=eps)

    def spec2d(shape):
        return pl.BlockSpec(shape, lambda i: (0, 0))

    out = pl.pallas_call(
        kernel,
        out_shape=jax.ShapeDtypeStruct((n_text, H), jnp.float32),
        grid_spec=pltpu.PrefetchScalarGridSpec(
            num_scalar_prefetch=0,
            grid=(1,),                                        # single step: no per-batch grid overhead
            in_specs=[
                spec2d((R, H)),                               # x_all (stacked text+vision)
                spec2d((R, H)),                               # gamma (per-row)
                spec2d((R, H)),                               # beta  (per-row)
                spec2d((H, 3 * H)),                           # fused W_qkv (bf16)
                spec2d((H, H)),                               # W_o (bf16)
                spec2d((num_heads * n_text, H)),              # head mask
                spec2d((num_heads * n_text, n_vis)),          # additive attention bias
            ],
            out_specs=spec2d((n_text, H)),
        ),
        compiler_params=pltpu.CompilerParams(dimension_semantics=("arbitrary",)),
    )(x_all, g_all, b_all, wqkv, wo_t, head_mask, bias)

    return out.reshape(B, T, H)


def _reference(text, vision, vision_mask, wq, wk, wv, wo, gt, bt, gv, bv,
               *, num_heads, eps=1e-5):
    """Pure-JAX f32 reference mirroring the PyTorch module."""
    B, T, H = text.shape
    V = vision.shape[1]
    d = H // num_heads
    scale = d ** -0.5

    def ln(x, g, b):
        mu = x.mean(-1, keepdims=True)
        var = ((x - mu) ** 2).mean(-1, keepdims=True)
        return (x - mu) / jnp.sqrt(var + eps) * g + b

    tn = ln(text, gt, bt)
    vn = ln(vision, gv, bv)
    q = tn @ wq.T
    k = vn @ wk.T
    v = vn @ wv.T
    q = q.reshape(B, T, num_heads, d).transpose(0, 2, 1, 3)
    k = k.reshape(B, V, num_heads, d).transpose(0, 2, 1, 3)
    v = v.reshape(B, V, num_heads, d).transpose(0, 2, 1, 3)
    scores = jnp.einsum('bhtd,bhsd->bhts', q, k) * scale
    mask = (vision_mask > 0)[:, None, None, :]
    scores = jnp.where(mask, scores, -jnp.inf)
    attn = jax.nn.softmax(scores, axis=-1)
    ctx = jnp.einsum('bhts,bhsd->bhtd', attn, v).transpose(0, 2, 1, 3).reshape(B, T, H)
    return text + ctx @ wo.T


if __name__ == "__main__":
    B, T, V, H, NH = 2, 8, 16, 32, 4

    key = jax.random.PRNGKey(0)
    ks = jax.random.split(key, 8)
    text = jax.random.normal(ks[0], (B, T, H), dtype=jnp.float32)
    vision = jax.random.normal(ks[1], (B, V, H), dtype=jnp.float32)

    scale_init = 0.02
    wq = jax.random.normal(ks[2], (H, H), dtype=jnp.float32) * scale_init
    wk = jax.random.normal(ks[3], (H, H), dtype=jnp.float32) * scale_init
    wv = jax.random.normal(ks[4], (H, H), dtype=jnp.float32) * scale_init
    wo = jax.random.normal(ks[5], (H, H), dtype=jnp.float32) * scale_init
    gt = jnp.ones((H,), jnp.float32)
    bt = jnp.zeros((H,), jnp.float32)
    gv = jnp.ones((H,), jnp.float32)
    bv = jnp.zeros((H,), jnp.float32)

    # vision mask: last 3 vision tokens of batch 1 masked out
    vision_mask = jnp.ones((B, V), dtype=jnp.int32)
    vision_mask = vision_mask.at[1, V - 3:].set(0)

    out = cross_modal_attention(text, vision, vision_mask,
                                wq, wk, wv, wo, gt, bt, gv, bv,
                                num_heads=NH)
    out = jax.block_until_ready(out)

    ref = _reference(text, vision, vision_mask, wq, wk, wv, wo, gt, bt, gv, bv,
                     num_heads=NH)
    assert out.shape == (B, T, H)
    # Kernel runs the matmul path in bf16 (f32 accumulation); compare vs f32 reference
    # with a tolerance appropriate for bf16 operands.
    assert jnp.allclose(out, ref, atol=1e-2, rtol=1e-2), "mismatch vs pure-JAX reference"
    print("KERNEL_OK")
</pallas_src>

<mosaic_0001>
module attributes {stable_mosaic.version = 11 : i64} {
  func.func @cross_modal_kernel(%arg0: i32, %arg1: memref<48x32xf32, #tpu.memory_space<vmem>>, %arg2: memref<48x32xf32, #tpu.memory_space<vmem>>, %arg3: memref<48x32xf32, #tpu.memory_space<vmem>>, %arg4: memref<32x96xbf16, #tpu.memory_space<vmem>>, %arg5: memref<32x32xbf16, #tpu.memory_space<vmem>>, %arg6: memref<64x32xf32, #tpu.memory_space<vmem>>, %arg7: memref<64x32xf32, #tpu.memory_space<vmem>>, %arg8: memref<16x32xf32, #tpu.memory_space<vmem>>) attributes {dimension_semantics = [#tpu.dimension_semantics<arbitrary>], iteration_bounds = array<i64: 1>, scalar_prefetch = 0 : i64, scratch_operands = 0 : i64, tpu.core_type = #tpu.core_type<tc>, window_params = [{pipeline_mode = #tpu.pipeline_mode<synchronous>, transform_indices = @transform_0, window_bounds = array<i64: 48, 32>}, {pipeline_mode = #tpu.pipeline_mode<synchronous>, transform_indices = @transform_1, window_bounds = array<i64: 48, 32>}, {pipeline_mode = #tpu.pipeline_mode<synchronous>, transform_indices = @transform_2, window_bounds = array<i64: 48, 32>}, {pipeline_mode = #tpu.pipeline_mode<synchronous>, transform_indices = @transform_3, window_bounds = array<i64: 32, 96>}, {pipeline_mode = #tpu.pipeline_mode<synchronous>, transform_indices = @transform_4, window_bounds = array<i64: 32, 32>}, {pipeline_mode = #tpu.pipeline_mode<synchronous>, transform_indices = @transform_5, window_bounds = array<i64: 64, 32>}, {pipeline_mode = #tpu.pipeline_mode<synchronous>, transform_indices = @transform_6, window_bounds = array<i64: 64, 32>}, {pipeline_mode = #tpu.pipeline_mode<synchronous>, transform_indices = @transform_7, window_bounds = array<i64: 16, 32>}]} {
    %c0 = arith.constant 0 : index
    %c0_0 = arith.constant 0 : index
    %0 = vector.load %arg1[%c0, %c0_0] : memref<48x32xf32, #tpu.memory_space<vmem>>, vector<48x32xf32>
    %cst = arith.constant dense<0.000000e+00> : vector<48xf32>
    %1 = vector.multi_reduction <add>, %0, %cst [1] : vector<48x32xf32> to vector<48xf32>
    %2 = vector.shape_cast %1 : vector<48xf32> to vector<48x1xf32>
    %cst_1 = arith.constant 3.200000e+01 : f32
    %3 = vector.broadcast %cst_1 : f32 to vector<48x1xf32>
    %4 = arith.divf %2, %3 : vector<48x1xf32>
    %5 = arith.mulf %0, %0 : vector<48x32xf32>
    %cst_2 = arith.constant dense<0.000000e+00> : vector<48xf32>
    %6 = vector.multi_reduction <add>, %5, %cst_2 [1] : vector<48x32xf32> to vector<48xf32>
    %7 = vector.shape_cast %6 : vector<48xf32> to vector<48x1xf32>
    %cst_3 = arith.constant 3.200000e+01 : f32
    %8 = vector.broadcast %cst_3 : f32 to vector<48x1xf32>
    %9 = arith.divf %7, %8 : vector<48x1xf32>
    %10 = arith.mulf %4, %4 : vector<48x1xf32>
    %11 = arith.subf %9, %10 : vector<48x1xf32>
    %12 = vector.broadcast %4 : vector<48x1xf32> to vector<48x32xf32>
    %13 = arith.subf %0, %12 : vector<48x32xf32>
    %cst_4 = arith.constant 9.99999974E-6 : f32
    %14 = vector.broadcast %cst_4 : f32 to vector<48x1xf32>
    %15 = arith.addf %11, %14 : vector<48x1xf32>
    %16 = math.rsqrt %15 : vector<48x1xf32>
    %17 = vector.broadcast %16 : vector<48x1xf32> to vector<48x32xf32>
    %18 = arith.mulf %13, %17 : vector<48x32xf32>
    %c0_5 = arith.constant 0 : index
    %c0_6 = arith.constant 0 : index
    %19 = vector.load %arg2[%c0_5, %c0_6] : memref<48x32xf32, #tpu.memory_space<vmem>>, vector<48x32xf32>
    %20 = arith.mulf %18, %19 : vector<48x32xf32>
    %c0_7 = arith.constant 0 : index
    %c0_8 = arith.constant 0 : index
    %21 = vector.load %arg3[%c0_7, %c0_8] : memref<48x32xf32, #tpu.memory_space<vmem>>, vector<48x32xf32>
    %22 = arith.addf %20, %21 : vector<48x32xf32>
    %23 = arith.truncf %22 : vector<48x32xf32> to vector<48x32xbf16>
    %c0_9 = arith.constant 0 : index
    %c0_10 = arith.constant 0 : index
    %24 = vector.load %arg4[%c0_9, %c0_10] : memref<32x96xbf16, #tpu.memory_space<vmem>>, vector<32x96xbf16>
    %cst_11 = arith.constant dense<0.000000e+00> : vector<48x96xf32>
    %25 = tpu.matmul %23, %24, %cst_11 {dimension_numbers = #tpu.dot_dimension_numbers<[1], [0], [0], [1], [0, 0, 1, 1], [], []>} : vector<48x32xbf16>, vector<32x96xbf16>, vector<48x96xf32> -> vector<48x96xf32>
    %26 = arith.truncf %25 : vector<48x96xf32> to vector<48x96xbf16>
    %27 = vector.extract_strided_slice %26 {offsets = [0, 0], sizes = [16, 32], strides = [1, 1]} : vector<48x96xbf16> to vector<16x32xbf16>
    %28 = vector.extract_strided_slice %26 {offsets = [16, 32], sizes = [32, 32], strides = [1, 1]} : vector<48x96xbf16> to vector<32x32xbf16>
    %29 = vector.extract_strided_slice %26 {offsets = [16, 64], sizes = [32, 32], strides = [1, 1]} : vector<48x96xbf16> to vector<32x32xbf16>
    %c0_12 = arith.constant 0 : index
    %c0_13 = arith.constant 0 : index
    %30 = vector.load %arg6[%c0_12, %c0_13] : memref<64x32xf32, #tpu.memory_space<vmem>>, vector<64x32xf32>
    %31 = tpu.concatenate %27, %27, %27, %27 in 0 : vector<16x32xbf16>, vector<16x32xbf16>, vector<16x32xbf16>, vector<16x32xbf16> -> vector<64x32xbf16>
    %32 = arith.truncf %30 : vector<64x32xf32> to vector<64x32xbf16>
    %33 = arith.mulf %31, %32 : vector<64x32xbf16>
    "tpu.trace_start"() <{level = 10 : i32, message = "rc,sc->rs"}> : () -> ()
    %cst_14 = arith.constant dense<0.000000e+00> : vector<64x32xf32>
    %34 = tpu.matmul %33, %28, %cst_14 {dimension_numbers = #tpu.dot_dimension_numbers<[1], [1], [0], [0], [0, 0, 1, 0], [], []>} : vector<64x32xbf16>, vector<32x32xbf16>, vector<64x32xf32> -> vector<64x32xf32>
    "tpu.trace_stop"() : () -> ()
    %c0_15 = arith.constant 0 : index
    %c0_16 = arith.constant 0 : index
    %35 = vector.load %arg7[%c0_15, %c0_16] : memref<64x32xf32, #tpu.memory_space<vmem>>, vector<64x32xf32>
    %36 = arith.addf %34, %35 : vector<64x32xf32>
    %cst_17 = arith.constant dense<0xFF800000> : vector<64xf32>
    %37 = vector.multi_reduction <maximumf>, %36, %cst_17 [1] : vector<64x32xf32> to vector<64xf32>
    %38 = vector.shape_cast %37 : vector<64xf32> to vector<64x1xf32>
    %39 = vector.broadcast %38 : vector<64x1xf32> to vector<64x32xf32>
    %40 = arith.subf %36, %39 : vector<64x32xf32>
    %41 = math.exp %40 : vector<64x32xf32>
    %cst_18 = arith.constant dense<0.000000e+00> : vector<64xf32>
    %42 = vector.multi_reduction <add>, %41, %cst_18 [1] : vector<64x32xf32> to vector<64xf32>
    %43 = vector.shape_cast %42 : vector<64xf32> to vector<64x1xf32>
    %44 = tpu.reciprocal %43 {approx = true} : vector<64x1xf32> -> vector<64x1xf32>
    %45 = vector.broadcast %44 : vector<64x1xf32> to vector<64x32xf32>
    %46 = arith.mulf %41, %45 : vector<64x32xf32>
    %47 = arith.truncf %46 : vector<64x32xf32> to vector<64x32xbf16>
    %cst_19 = arith.constant dense<0.000000e+00> : vector<64x32xf32>
    %48 = tpu.matmul %47, %29, %cst_19 {dimension_numbers = #tpu.dot_dimension_numbers<[1], [0], [0], [1], [0, 0, 1, 1], [], []>} : vector<64x32xbf16>, vector<32x32xbf16>, vector<64x32xf32> -> vector<64x32xf32>
    %49 = arith.mulf %48, %30 : vector<64x32xf32>
    %50 = vector.extract_strided_slice %49 {offsets = [0, 0], sizes = [16, 32], strides = [1, 1]} : vector<64x32xf32> to vector<16x32xf32>
    %51 = vector.extract_strided_slice %49 {offsets = [16, 0], sizes = [16, 32], strides = [1, 1]} : vector<64x32xf32> to vector<16x32xf32>
    %52 = arith.addf %50, %51 : vector<16x32xf32>
    %53 = vector.extract_strided_slice %49 {offsets = [32, 0], sizes = [16, 32], strides = [1, 1]} : vector<64x32xf32> to vector<16x32xf32>
    %54 = arith.addf %52, %53 : vector<16x32xf32>
    %55 = vector.extract_strided_slice %49 {offsets = [48, 0], sizes = [16, 32], strides = [1, 1]} : vector<64x32xf32> to vector<16x32xf32>
    %56 = arith.addf %54, %55 : vector<16x32xf32>
    %57 = arith.truncf %56 : vector<16x32xf32> to vector<16x32xbf16>
    %c0_20 = arith.constant 0 : index
    %c0_21 = arith.constant 0 : index
    %58 = vector.load %arg5[%c0_20, %c0_21] : memref<32x32xbf16, #tpu.memory_space<vmem>>, vector<32x32xbf16>
    %cst_22 = arith.constant dense<0.000000e+00> : vector<16x32xf32>
    %59 = tpu.matmul %57, %58, %cst_22 {dimension_numbers = #tpu.dot_dimension_numbers<[1], [0], [0], [1], [0, 0, 1, 1], [], []>} : vector<16x32xbf16>, vector<32x32xbf16>, vector<16x32xf32> -> vector<16x32xf32>
    %60 = vector.extract_strided_slice %0 {offsets = [0, 0], sizes = [16, 32], strides = [1, 1]} : vector<48x32xf32> to vector<16x32xf32>
    %61 = arith.addf %60, %59 : vector<16x32xf32>
    %c0_23 = arith.constant 0 : index
    %c0_24 = arith.constant 0 : index
    %62 = vector.load %arg8[%c0_23, %c0_24] : memref<16x32xf32, #tpu.memory_space<vmem>>, vector<16x32xf32>
    tpu.vector_store %arg8[%c0_23, %c0_24], %61 {strides = array<i32>} : memref<16x32xf32, #tpu.memory_space<vmem>>, vector<16x32xf32>,
    return
  }
  func.func @transform_0(%arg0: i32) -> (i32, i32) {
    %c0_i32 = arith.constant 0 : i32
    %c0_i32_0 = arith.constant 0 : i32
    %c0_i32_1 = arith.constant 0 : i32
    return %c0_i32, %c0_i32_0 : i32, i32
  }
  func.func @transform_1(%arg0: i32) -> (i32, i32) {
    %c0_i32 = arith.constant 0 : i32
    %c0_i32_0 = arith.constant 0 : i32
    %c0_i32_1 = arith.constant 0 : i32
    return %c0_i32, %c0_i32_0 : i32, i32
  }
  func.func @transform_2(%arg0: i32) -> (i32, i32) {
    %c0_i32 = arith.constant 0 : i32
    %c0_i32_0 = arith.constant 0 : i32
    %c0_i32_1 = arith.constant 0 : i32
    return %c0_i32, %c0_i32_0 : i32, i32
  }
  func.func @transform_3(%arg0: i32) -> (i32, i32) {
    %c0_i32 = arith.constant 0 : i32
    %c0_i32_0 = arith.constant 0 : i32
    %c0_i32_1 = arith.constant 0 : i32
    return %c0_i32, %c0_i32_0 : i32, i32
  }
  func.func @transform_4(%arg0: i32) -> (i32, i32) {
    %c0_i32 = arith.constant 0 : i32
    %c0_i32_0 = arith.constant 0 : i32
    %c0_i32_1 = arith.constant 0 : i32
    return %c0_i32, %c0_i32_0 : i32, i32
  }
  func.func @transform_5(%arg0: i32) -> (i32, i32) {
    %c0_i32 = arith.constant 0 : i32
    %c0_i32_0 = arith.constant 0 : i32
    %c0_i32_1 = arith.constant 0 : i32
    return %c0_i32, %c0_i32_0 : i32, i32
  }
  func.func @transform_6(%arg0: i32) -> (i32, i32) {
    %c0_i32 = arith.constant 0 : i32
    %c0_i32_0 = arith.constant 0 : i32
    %c0_i32_1 = arith.constant 0 : i32
    return %c0_i32, %c0_i32_0 : i32, i32
  }
  func.func @transform_7(%arg0: i32) -> (i32, i32) {
    %c0_i32 = arith.constant 0 : i32
    %c0_i32_0 = arith.constant 0 : i32
    %c0_i32_1 = arith.constant 0 : i32
    return %c0_i32, %c0_i32_0 : i32, i32
  }
}

</mosaic_0001>

<bundles_post_ra>
// kernel: tpu_custom_call.1
= control target key start
LH: loop header
LB: loop body
LE: loop exit
PB: predicated region body
PF: predicated region fallthrough
CT: control target
= control target key end

     0   :  { %vm34_vm0 = vcmask 261120   ;;  %s1095_s0 = inlined_call_operand.vmem [shape: f32[48,32], index: 0, kind: input, shape index: {}]   ;;  %s1096_s1 = inlined_call_operand.vmem [shape: f32[48,32], index: 1, kind: input, shape index: {}]   ;;  %s1097_s2 = inlined_call_operand.vmem [shape: f32[48,32], index: 2, kind: input, shape index: {}]   ;;  %s1098_s3 = inlined_call_operand.vmem [shape: bf16[32,96], index: 3, kind: input, shape index: {}]   ;;  %s1099_s4 = inlined_call_operand.vmem [shape: bf16[32,32], index: 4, kind: input, shape index: {}]   ;;  %s1100_s5 = inlined_call_operand.vmem [shape: f32[64,32], index: 5, kind: input, shape index: {}]   ;;  %s1101_s6 = inlined_call_operand.vmem [shape: f32[64,32], index: 6, kind: input, shape index: {}]   ;;  %s1102_s7 = inlined_call_operand.hbm [shape: f32[16,32], index: 7, kind: output, shape index: {}]  }
   0x1   :  { %v836_v0 = vld [vmem:[%s1095_s0] sm:$0xff]  ;;  %v841_v1 = vld [vmem:[%s1095_s0 + $0x8] sm:$0xff]  ;;  %v856_v8 = vld [vmem:[%s1095_s0 + $0x10] sm:$0xff] }
   0x2   :  { %v35_v2 = vsel %vm34_vm0, %v836_v0, 0.0  ;;  %v60_v3 = vmul.f32 %v836_v0, %v836_v0  ;;  %v61_v4 = vmul.f32 %v841_v1, %v841_v1  ;;  %v38_v6 = vsel %vm34_vm0, %v841_v1, 0.0  ;;  %v861_v9 = vld [vmem:[%s1095_s0 + $0x18] sm:$0xff] }
   0x3   :  { %36 = vadd.xlane.f32.xlu0 %v35_v2 }
   0x4   :  { %v66_v5 = vsel %vm34_vm0, %v60_v3, 0.0  ;;  %v69_v7 = vsel %vm34_vm0, %v61_v4, 0.0 }
   0x5   :  { %67 = vadd.xlane.f32.xlu1 %v66_v5 }
   0x7   :  { %39 = vadd.xlane.f32.xlu0 %v38_v6 }
   0x8   :  { %12 = vsyncpa [#allocation3], 0  ;;  %v41_v10 = vsel %vm34_vm0, %v856_v8, 0.0  ;;  %v62_v11 = vmul.f32 %v856_v8, %v856_v8  ;;  %v44_v12 = vsel %vm34_vm0, %v861_v9, 0.0  ;;  %v63_v13 = vmul.f32 %v861_v9, %v861_v9  ;;  %v875_v15 = vld [vmem:[%s1095_s0 + $0x20] sm:$0xff]  ;;  %v881_v17 = vld [vmem:[%s1095_s0 + $0x28] sm:$0xff] }
   0x9   :  { %70 = vadd.xlane.f32.xlu1 %v69_v7  ;;  %v47_v18 = vsel %vm34_vm0, %v875_v15, 0.0  ;;  %v64_v19 = vmul.f32 %v875_v15, %v875_v15  ;;  %v50_v20 = vsel %vm34_vm0, %v881_v17, 0.0  ;;  %v65_v21 = vmul.f32 %v881_v17, %v881_v17  ;;  %v714_v24 = vld [vmem:[%s1098_s3] sm:$0xff]   ;;  %v715_v26 = vld [vmem:[%s1098_s3 + $0x8] sm:$0xff]  }
   0xa   :  { %v72_v14 = vsel %vm34_vm0, %v62_v11, 0.0  ;;  %v75_v16 = vsel %vm34_vm0, %v63_v13, 0.0  ;;  %v786_v25 = vmov 0.0   ;;  %vm787_vm1 = vmmov 0   ;;  %v126_v3 = vld [vmem:[%s1096_s1] sm:$0xff] }
   0xb   :  { %42 = vadd.xlane.f32.xlu0 %v41_v10  ;;  %v78_v22 = vsel %vm34_vm0, %v64_v19, 0.0  ;;  %v81_v23 = vsel %vm34_vm0, %v65_v21, 0.0  ;;  %657 = vmatprep.subr.bf16.mxu0 %v786_v25  ;;  %v138_v19 = vld [vmem:[%s1097_s2] sm:$0xff] }
   0xc   :  { %658 = vmatpush3.bf16.msra.mxu0 %v714_v24  ;;  %661 = vmatprep.mubr.msk.bf16.mxu0 %vm787_vm1, %v786_v25 }
   0xd   :  { %45 = vadd.xlane.f32.xlu1 %v44_v12  ;;  %659 = vmatprep.subr.bf16.mxu0 %v786_v25  ;;  %v127_v12 = vld [vmem:[%s1096_s1 + $0x8] sm:$0xff] }
   0xf   :  { %73 = vadd.xlane.f32.xlu0 %v72_v14 }
  0x10   :  { %660 = vmatpush3.bf16.msra.mxu0 %v715_v26 }
  0x11   :  { %76 = vadd.xlane.f32.xlu1 %v75_v16 }
  0x13   :  { %48 = vadd.xlane.f32.xlu0 %v47_v18 }
  0x15   :  { %51 = vadd.xlane.f32.xlu1 %v50_v20  ;;  %v139_v20 = vld [vmem:[%s1097_s2 + $0x8] sm:$0xff] }
  0x17   :  { %79 = vadd.xlane.f32.xlu0 %v78_v22 }
  0x19   :  { %82 = vadd.xlane.f32.xlu1 %v81_v23 }
  0x90   :  { %v37_v27 = vpop.xlane.xlu0 %36 }
  0x91   :  { %v54_v28 = vmul.f32 0.03125, %v37_v27 }
  0x92   :  { %v68_v29 = vpop.xlane.xlu1 %67 }
  0x93   :  { %v90_v30 = vmul.f32 %v54_v28, %v54_v28  ;;  %v84_v31 = vmul.f32 0.03125, %v68_v29  ;;  %v102_v56 = vsub.f32 %v836_v0, %v54_v28  ;;  %v128_v28 = vld [vmem:[%s1096_s1 + $0x10] sm:$0xff] }
  0x94   :  { %v40_v32 = vpop.xlane.xlu0 %39 }
  0x95   :  { %v96_v33 = vsub.f32 %v84_v31, %v90_v30  ;;  %v55_v34 = vmul.f32 0.03125, %v40_v32 }
  0x96   :  { %v71_v35 = vpop.xlane.xlu1 %70 }
  0x97   :  { %v108_v36 = vadd.f32 1e-05, %v96_v33  ;;  %v91_v37 = vmul.f32 %v55_v34, %v55_v34  ;;  %v85_v38 = vmul.f32 0.03125, %v71_v35  ;;  %v103_v4 = vsub.f32 %v841_v1, %v55_v34  ;;  %v129_v33 = vld [vmem:[%s1096_s1 + $0x18] sm:$0xff]  ;;  %v140_v35 = vld [vmem:[%s1097_s2 + $0x10] sm:$0xff] }
  0x98   :  { %v43_v39 = vpop.xlane.xlu0 %42 }
  0x99   :  { %718 = vrsqrt.f32 %v108_v36  ;;  %v97_v40 = vsub.f32 %v85_v38, %v91_v37  ;;  %v56_v41 = vmul.f32 0.03125, %v43_v39 }
  0x9a   :  { %v46_v42 = vpop.xlane.xlu1 %45 }
  0x9b   :  { %v109_v43 = vadd.f32 1e-05, %v97_v40  ;;  %v92_v44 = vmul.f32 %v56_v41, %v56_v41  ;;  %v57_v45 = vmul.f32 0.03125, %v46_v42  ;;  %v104_v23 = vsub.f32 %v856_v8, %v56_v41  ;;  %v130_v41 = vld [vmem:[%s1096_s1 + $0x20] sm:$0xff] }
  0x9c   :  { %v74_v46 = vpop.xlane.xlu0 %73 }
  0x9d   :  { %720 = vrsqrt.f32 %v109_v43  ;;  %v86_v47 = vmul.f32 0.03125, %v74_v46  ;;  %v93_v49 = vmul.f32 %v57_v45, %v57_v45  ;;  %v105_v29 = vsub.f32 %v861_v9, %v57_v45  ;;  %v141_v9 = vld [vmem:[%s1097_s2 + $0x18] sm:$0xff]  ;;  %v131_v46 = vld [vmem:[%s1096_s1 + $0x28] sm:$0xff] }
  0x9e   :  { %v77_v48 = vpop.xlane.xlu1 %76 }
  0x9f   :  { %v98_v50 = vsub.f32 %v86_v47, %v92_v44  ;;  %v87_v51 = vmul.f32 0.03125, %v77_v48  ;;  %v142_v48 = vld [vmem:[%s1097_s2 + $0x20] sm:$0xff] }
  0xa0   :  { %v49_v52 = vpop.xlane.xlu0 %48 }
  0xa1   :  { %v110_v53 = vadd.f32 1e-05, %v98_v50  ;;  %v99_v54 = vsub.f32 %v87_v51, %v93_v49  ;;  %v58_v55 = vmul.f32 0.03125, %v49_v52 }
  0xa2   :  { %v52_v57 = vpop.xlane.xlu1 %51 }
  0xa3   :  { %v719_v58 = vpop.eup %718  ;;  %722 = vrsqrt.f32 %v110_v53  ;;  %v111_v59 = vadd.f32 1e-05, %v99_v54  ;;  %v94_v60 = vmul.f32 %v58_v55, %v58_v55  ;;  %v59_v61 = vmul.f32 0.03125, %v52_v57  ;;  %v955_v53 = vld [vmem:[%s1100_s5] sm:$0xff]  ;;  %v960_v54 = vld [vmem:[%s1100_s5 + $0x8] sm:$0xff] }
  0xa4   :  { %v80_v62 = vpop.xlane.xlu0 %79  ;;  %v120_v63 = vmul.f32 %v719_v58, %v102_v56  ;;  %v106_v37 = vsub.f32 %v875_v15, %v58_v55  ;;  %v246_v57 = vpack.c.bf16 %v960_v54, %v955_v53 }
  0xa5   :  { %724 = vrsqrt.f32 %v111_v59  ;;  %v88_v2 = vmul.f32 0.03125, %v80_v62  ;;  %v95_v7 = vmul.f32 %v59_v61, %v59_v61  ;;  %v107_v42 = vsub.f32 %v881_v17, %v59_v61  ;;  %v143_v17 = vld [vmem:[%s1097_s2 + $0x28] sm:$0xff]  ;;  %s788_s2 = smov 96  }
  0xa6   :  { %v83_v5 = vpop.xlane.xlu1 %82  ;;  %v132_v14 = vmul.f32 %v126_v3, %v120_v63 }
  0xa7   :  { %v721_v6 = vpop.eup %720  ;;  %v100_v10 = vsub.f32 %v88_v2, %v94_v60  ;;  %v89_v11 = vmul.f32 0.03125, %v83_v5 }
  0xa8   :  { %v121_v13 = vmul.f32 %v721_v6, %v103_v4  ;;  %v144_v24 = vadd.f32 %v138_v19, %v132_v14 }
  0xa9   :  { %v112_v16 = vadd.f32 1e-05, %v100_v10  ;;  %v101_v18 = vsub.f32 %v89_v11, %v95_v7 }
  0xaa   :  { %v133_v21 = vmul.f32 %v127_v12, %v121_v13 }
  0xab   :  { %726 = vrsqrt.f32 %v112_v16  ;;  %v113_v22 = vadd.f32 1e-05, %v101_v18  ;;  %v976_v16 = vld [vmem:[%s1100_s5 + $0x10] sm:$0xff]  ;;  %v981_v18 = vld [vmem:[%s1100_s5 + $0x18] sm:$0xff] }
  0xac   :  { %v145_v26 = vadd.f32 %v139_v20, %v133_v21  ;;  %v988_v20 = vld [vmem:[%s1100_s5 + $0x20] sm:$0xff]  ;;  %v993_v21 = vld [vmem:[%s1100_s5 + $0x28] sm:$0xff] }
  0xad   :  { %v723_v27 = vpop.eup %722  ;;  %728 = vrsqrt.f32 %v113_v22  ;;  %v247_v22 = vpack.c.bf16 %v981_v18, %v976_v16 }
  0xae   :  { %v150_v30 = vpack.c.bf16 %v145_v26, %v144_v24  ;;  %v122_v31 = vmul.f32 %v723_v27, %v104_v23  ;;  %v248_v23 = vpack.c.bf16 %v993_v21, %v988_v20  ;;  %v1003_v27 = vld [vmem:[%s1100_s5 + $0x30] sm:$0xff] }
  0xaf   :  { %v725_v32 = vpop.eup %724 }
  0xb0   :  { %662 = vmatmul.mubr.msk.bf16.vlgmr.msra.gmra.mrb[0].mxu0 %vm34_vm0, %v150_v30  ;;  %v123_v8 = vmul.f32 %v725_v32, %v105_v29  ;;  %v134_v34 = vmul.f32 %v128_v28, %v122_v31  ;;  %v1008_v28 = vld [vmem:[%s1100_s5 + $0x38] sm:$0xff]  ;;  %v254_v31 = vld [vmem:[%s1101_s6] sm:$0xff] }
  0xb1   :  { %665 = vmatprep.mubr.msk.bf16.mxu0 %vm787_vm1, %v786_v25  ;;  %v249_v29 = vpack.c.bf16 %v1008_v28, %v1003_v27 }
  0xb2   :  { %v135_v36 = vmul.f32 %v129_v33, %v123_v8  ;;  %v146_v38 = vadd.f32 %v140_v35, %v134_v34  ;;  %v257_v8 = vld [vmem:[%s1101_s6 + $0x18] sm:$0xff]  ;;  %v255_v34 = vld [vmem:[%s1101_s6 + $0x8] sm:$0xff] }
  0xb4   :  { %v147_v39 = vadd.f32 %v141_v9, %v135_v36  ;;  %v256_v36 = vld [vmem:[%s1101_s6 + $0x10] sm:$0xff] }
  0xb5   :  { %v727_v40 = vpop.eup %726 }
  0xb6   :  { %v151_v43 = vpack.c.bf16 %v147_v39, %v146_v38  ;;  %v124_v44 = vmul.f32 %v727_v40, %v106_v37 }
  0xb7   :  { %v729_v45 = vpop.eup %728 }
  0xb8   :  { %666 = vmatmul.mubr.msk.bf16.gmra.mrb[4].mxu0 %vm34_vm0, %v151_v43  ;;  %v125_v47 = vmul.f32 %v729_v45, %v107_v42  ;;  %v136_v15 = vmul.f32 %v130_v41, %v124_v44  ;;  %v258_v43 = vld [vmem:[%s1101_s6 + $0x20] sm:$0xff] }
  0xb9   :  { %669 = vmatprep.mubr.msk.bf16.mxu0 %vm787_vm1, %v786_v25 }
  0xba   :  { %v137_v49 = vmul.f32 %v131_v46, %v125_v47  ;;  %v148_v50 = vadd.f32 %v142_v48, %v136_v15  ;;  %v259_v47 = vld [vmem:[%s1101_s6 + $0x28] sm:$0xff] }
  0xbc   :  { %v149_v51 = vadd.f32 %v143_v17, %v137_v49  ;;  %v260_v49 = vld [vmem:[%s1101_s6 + $0x30] sm:$0xff] }
  0xbe   :  { %v152_v52 = vpack.c.bf16 %v149_v51, %v148_v50  ;;  %v261_v50 = vld [vmem:[%s1101_s6 + $0x38] sm:$0xff]  ;;  %s789_s6 = smov 64  }
  0xc0   :  { %670 = vmatmul.mubr.msk.bf16.gmra.mrb[8].mxu0 %vm34_vm0, %v152_v52 }
 0x183   :  { %v212_v55 = vpop.f32.mrb[0].mxu0 }
 0x184   :  { %v663_v56 = vpop.f32.mrb[1].mxu0 }
 0x185   :  { %v215_v58 = vpop.f32.mrb[2].mxu0 }
 0x186   :  { %v235_v59 = vpack.c.bf16 %v215_v58, %v212_v55  ;;  %v664_v60 = vpop.f32.mrb[3].mxu0 }
 0x188   :  { %v250_v61 = vmul.bf16 %v246_v57, %v235_v59  ;;  %v251_v24 = vmul.bf16 %v247_v22, %v235_v59  ;;  %v252_v26 = vmul.bf16 %v248_v23, %v235_v59  ;;  %v253_v30 = vmul.bf16 %v249_v29, %v235_v59 }
 0x18a   :  { %677 = vmatprep.mubr.msk.bf16.mxu1 %vm34_vm0, %v250_v61 }
 0x18b   :  { %v220_v62 = vpop.f32.mrb[4].mxu0 }
 0x18c   :  { %v667_v63 = vpop.f32.mrb[5].mxu0 }
 0x18d   :  { %v223_v2 = vpop.f32.mrb[6].mxu0 }
 0x18e   :  { %v965_v3 = vpack.c.bf16 %v223_v2, %v220_v62  ;;  %v668_v4 = vpop.f32.mrb[7].mxu0 }
 0x190   :  { %264 = vrot.lane.b32.xlu0 %v965_v3, %s788_s2 }
 0x193   :  { %v228_v5 = vpop.f32.mrb[8].mxu0 }
 0x194   :  { %v671_v6 = vpop.f32.mrb[9].mxu0 }
 0x195   :  { %v231_v7 = vpop.f32.mrb[10].mxu0 }
 0x196   :  { %v968_v10 = vpack.c.bf16 %v231_v7, %v228_v5  ;;  %v672_v11 = vpop.f32.mrb[11].mxu0 }
 0x198   :  { %266 = vrot.lane.b32.xlu1 %v968_v10, %s788_s2 }
 0x202   :  { %v265_v12 = vpop.permute.xlu0 %264 }
 0x203   :  { %705 = vmatprep.subr.msk.bf16.mxu1 %vm34_vm0, %v265_v12  ;;  %v281_v13 = vsel %vm34_vm0, %v265_v12, 0 }
 0x204   :  { %674 = vmatpush3.bf16.xpose.msra.mxu1 %v281_v13 }
 0x20a   :  { %v267_v14 = vpop.permute.xlu1 %266 }
 0x20b   :  { %706 = vmatprep.subr.msk.bf16.mxu1 %vm34_vm0, %v267_v14  ;;  %v284_v19 = vsel %vm34_vm0, %v267_v14, 0 }
 0x20c   :  { %676 = vmatpush3.bf16.xpose.msra.mxu1 %v284_v19 }
 0x20d   :  { %697 = vmatprep.subr.bf16.mxu1 %v786_v25 }
 0x213   :  { %678 = vmatmul.mubr.msk.bf16.vlgmr.msra.gmra.mrb[0].mxu1 %vm34_vm0, %v251_v24 }
 0x214   :  { %681 = vmatprep.mubr.msk.bf16.mxu1 %vm34_vm0, %v252_v26 }
 0x21b   :  { %682 = vmatmul.mubr.msk.bf16.gmra.mrb[4].mxu1 %vm34_vm0, %v253_v30 }
 0x21c   :  { %701 = vmatprep.mubr.msk.bf16.mxu1 %vm787_vm1, %v786_v25 }
 0x2e6   :  { %v679_v32 = vpop.f32.mrb[0].mxu1 }
 0x2e7   :  { %v320_v33 = vpop.f32.mrb[1].mxu1  ;;  %v329_v41 = vadd.f32 %v679_v32, %v256_v36 }
 0x2e8   :  { %v321_v35 = vadd.f32 %v320_v33, %v254_v31  ;;  %v680_v9 = vpop.f32.mrb[2].mxu1 }
 0x2e9   :  { %v323_v37 = vpop.f32.mrb[3].mxu1  ;;  %v332_v38 = vadd.f32 %v680_v9, %v257_v8  ;;  %v357_v17 = vsel %vm34_vm0, %v329_v41, -inf }
 0x2ea   :  { %v324_v39 = vadd.f32 %v323_v37, %v255_v34  ;;  %v351_v40 = vsel %vm34_vm0, %v321_v35, -inf }
 0x2eb   :  { %352 = vmax.xlane.f32.xlu1 %v351_v40  ;;  %v360_v45 = vsel %vm34_vm0, %v332_v38, -inf }
 0x2ec   :  { %v354_v42 = vsel %vm34_vm0, %v324_v39, -inf }
 0x2ed   :  { %355 = vmax.xlane.f32.xlu0 %v354_v42 }
 0x2ee   :  { %v683_v44 = vpop.f32.mrb[4].mxu1 }
 0x2ef   :  { %v336_v46 = vpop.f32.mrb[5].mxu1  ;;  %361 = vmax.xlane.f32.xlu1 %v360_v45  ;;  %v345_v55 = vadd.f32 %v683_v44, %v260_v49 }
 0x2f0   :  { %v337_v15 = vadd.f32 %v336_v46, %v258_v43  ;;  %v684_v48 = vpop.f32.mrb[6].mxu1 }
 0x2f1   :  { %v339_v51 = vpop.f32.mrb[7].mxu1  ;;  %358 = vmax.xlane.f32.xlu0 %v357_v17  ;;  %v348_v56 = vadd.f32 %v684_v48, %v261_v50  ;;  %v369_v59 = vsel %vm34_vm0, %v345_v55, -inf }
 0x2f2   :  { %v340_v52 = vadd.f32 %v339_v51, %v259_v47  ;;  %v363_v57 = vsel %vm34_vm0, %v337_v15, -inf }
 0x2f3   :  { %v372_v60 = vsel %vm34_vm0, %v348_v56, -inf }
 0x2f4   :  { %v366_v58 = vsel %vm34_vm0, %v340_v52, -inf }
 0x2f5   :  { %364 = vmax.xlane.f32.xlu0 %v363_v57  ;;  %367 = vmax.xlane.f32.xlu1 %v366_v58 }
 0x2f9   :  { %370 = vmax.xlane.f32.xlu0 %v369_v59  ;;  %373 = vmax.xlane.f32.xlu1 %v372_v60 }
 0x378   :  { %v353_v61 = vpop.xlane.xlu1 %352 }
 0x379   :  { %v375_v4 = vsub.f32 %v321_v35, %v353_v61 }
 0x37a   :  { %v356_v62 = vpop.xlane.xlu0 %355 }
 0x37b   :  { %v376_v63 = vsub.f32 %v324_v39, %v356_v62  ;;  %v383_v13 = vmul.f32 1.442695, %v375_v4 }
 0x37c   :  { %v362_v2 = vpop.xlane.xlu1 %361 }
 0x37d   :  { %v378_v5 = vsub.f32 %v332_v38, %v362_v2  ;;  %v385_v6 = vmul.f32 1.442695, %v376_v63 }
 0x37e   :  { %v359_v7 = vpop.xlane.xlu0 %358 }
 0x37f   :  { %v389_v11 = vmul.f32 1.442695, %v378_v5  ;;  %v377_v12 = vsub.f32 %v329_v41, %v359_v7 }
 0x381   :  { %730 = vpow2.f32 %v389_v11  ;;  %v387_v14 = vmul.f32 1.442695, %v377_v12 }
 0x382   :  { %732 = vpow2.f32 %v385_v6  ;;  %v365_v19 = vpop.xlane.xlu0 %364  ;;  %v368_v22 = vpop.xlane.xlu1 %367 }
 0x383   :  { %734 = vpow2.f32 %v387_v14  ;;  %v379_v23 = vsub.f32 %v337_v15, %v365_v19  ;;  %v380_v24 = vsub.f32 %v340_v52, %v368_v22 }
 0x384   :  { %736 = vpow2.f32 %v383_v13 }
 0x385   :  { %v391_v32 = vmul.f32 1.442695, %v379_v23  ;;  %v393_v34 = vmul.f32 1.442695, %v380_v24 }
 0x386   :  { %v371_v26 = vpop.xlane.xlu0 %370  ;;  %v374_v29 = vpop.xlane.xlu1 %373 }
 0x387   :  { %v381_v30 = vsub.f32 %v345_v55, %v371_v26  ;;  %v382_v31 = vsub.f32 %v348_v56, %v374_v29  ;;  %v716_v29 = vld [vmem:[%s1099_s4] sm:$0xff]  }
 0x388   :  { %698 = vmatpush3.bf16.msra.mxu1 %v716_v29 }
 0x389   :  { %v395_v33 = vmul.f32 1.442695, %v381_v30  ;;  %v397_v8 = vmul.f32 1.442695, %v382_v31  ;;  %699 = vmatprep.subr.bf16.mxu1 %v786_v25  ;;  %v717_v30 = vld [vmem:[%s1099_s4 + $0x8] sm:$0xff]   ;;  %s790_s4 = smov [#allocation2]  }
 0x38a   :  { %s610_s21 = sshll.u32 %s790_s4, 4  ;;  %s611_s21 = int_to_ptr.vmem [resolvable:$true] %s610_s21 }
 0x38b   :  { %v731_v35 = vpop.eup %730  ;;  %738 = vpow2.f32 %v395_v33  ;;  %s762_s22 = scalar_lea.vmem %s611_s21, 256  ;;  %p767_p1 = scmp.lt.s32.totalorder %s611_s21, %s611_s21 }
 0x38c   :  { %v733_v9 = vpop.eup %732  ;;  %740 = vpow2.f32 %v397_v8  ;;  %v408_v36 = vsel %vm34_vm0, %v731_v35, 0.0  ;;  %700 = vmatpush3.bf16.msra.mxu1 %v717_v30  ;;  %p763_p0 = scmp.ne.s32.totalorder %s611_s21, %s762_s22  ;;  %p768_p2 = scmp.lt.s32.totalorder %s762_s22, %s762_s22 }
 0x38d   :  { %v735_v37 = vpop.eup %734  ;;  %742 = vpow2.f32 %v391_v32  ;;  %409 = vadd.xlane.f32.xlu1 %v408_v36  ;;  %v402_v40 = vsel %vm34_vm0, %v733_v9, 0.0 }
 0x38e   :  { %744 = vpow2.f32 %v393_v34  ;;  %v405_v38 = vsel %vm34_vm0, %v735_v37, 0.0  ;;  %v737_v39 = vpop.eup %736  ;;  %p769_p3 = por %p768_p2, %p767_p1 }
 0x38f   :  { %406 = vadd.xlane.f32.xlu0 %v405_v38  ;;  %v399_v41 = vsel %vm34_vm0, %v737_v39, 0.0 }
 0x390   :  { %p770_p4 = pnand %p769_p3, %p763_p0 }
 0x391   :  { %403 = vadd.xlane.f32.xlu1 %v402_v40 }
 0x393   :  { %400 = vadd.xlane.f32.xlu0 %v399_v41 }
 0x395   :  { %v739_v42 = vpop.eup %738 }
 0x396   :  { %v741_v43 = vpop.eup %740  ;;  %v417_v44 = vsel %vm34_vm0, %v739_v42, 0.0 }
 0x397   :  { %v743_v45 = vpop.eup %742  ;;  %418 = vadd.xlane.f32.xlu0 %v417_v44  ;;  %v420_v46 = vsel %vm34_vm0, %v741_v43, 0.0 }
 0x398   :  { %v745_v47 = vpop.eup %744  ;;  %421 = vadd.xlane.f32.xlu1 %v420_v46  ;;  %v411_v15 = vsel %vm34_vm0, %v743_v45, 0.0 }
 0x399   :  { %v414_v48 = vsel %vm34_vm0, %v745_v47, 0.0 }
 0x39b   :  { %412 = vadd.xlane.f32.xlu0 %v411_v15 }
 0x39c   :  { %415 = vadd.xlane.f32.xlu1 %v414_v48 }
 0x3ad   :  { %445 = vrot.lane.b32.xlu1 %v968_v10, %s789_s6 }
 0x3b1   :  { %443 = vrot.lane.b32.xlu0 %v965_v3, %s789_s6 }
 0x41a   :  { %v410_v17 = vpop.xlane.xlu1 %409 }
 0x41c   :  { %v407_v49 = vpop.xlane.xlu0 %406 }
 0x41e   :  { %v404_v50 = vpop.xlane.xlu1 %403 }
 0x41f   :  { %746 = vrcp.f32 %v404_v50 }
 0x420   :  { %v401_v51 = vpop.xlane.xlu0 %400 }
 0x421   :  { %748 = vrcp.f32 %v401_v51 }
 0x422   :  { %750 = vrcp.f32 %v407_v49 }
 0x423   :  { %752 = vrcp.f32 %v410_v17 }
 0x424   :  { %v419_v52 = vpop.xlane.xlu0 %418 }
 0x425   :  { %v422_v55 = vpop.xlane.xlu1 %421  ;;  %754 = vrcp.f32 %v419_v52 }
 0x426   :  { %756 = vrcp.f32 %v422_v55 }
 0x428   :  { %v413_v56 = vpop.xlane.xlu0 %412 }
 0x429   :  { %v747_v57 = vpop.eup %746  ;;  %758 = vrcp.f32 %v413_v56  ;;  %v416_v58 = vpop.xlane.xlu1 %415 }
 0x42a   :  { %760 = vrcp.f32 %v416_v58  ;;  %v432_v61 = vmul.f32 %v747_v57, %v733_v9 }
 0x42b   :  { %v749_v10 = vpop.eup %748 }
 0x42c   :  { %v751_v59 = vpop.eup %750  ;;  %v444_v3 = vpop.permute.xlu0 %443  ;;  %v431_v60 = vmul.f32 %v749_v10, %v737_v39 }
 0x42d   :  { %685 = vmatprep.subr.bf16.mxu0 %v444_v3  ;;  %v753_v62 = vpop.eup %752  ;;  %v446_v63 = vpop.permute.xlu1 %445  ;;  %v433_v4 = vmul.f32 %v751_v59, %v735_v37 }
 0x42e   :  { %686 = vmatpush3.bf16.msra.mxu0 %v444_v3  ;;  %v439_v2 = vpack.c.bf16 %v432_v61, %v431_v60  ;;  %v434_v6 = vmul.f32 %v753_v62, %v731_v35 }
 0x42f   :  { %687 = vmatprep.subr.bf16.mxu0 %v446_v63  ;;  %v755_v5 = vpop.eup %754 }
 0x430   :  { %689 = vmatprep.mubr.msk.bf16.mxu0 %vm34_vm0, %v439_v2  ;;  %v757_v7 = vpop.eup %756  ;;  %v440_v12 = vpack.c.bf16 %v434_v6, %v433_v4  ;;  %v437_v23 = vmul.f32 %v755_v5, %v739_v42 }
 0x431   :  { %v438_v24 = vmul.f32 %v757_v7, %v741_v43 }
 0x432   :  { %688 = vmatpush3.bf16.msra.mxu0 %v446_v63 }
 0x433   :  { %v759_v11 = vpop.eup %758  ;;  %v442_v26 = vpack.c.bf16 %v438_v24, %v437_v23 }
 0x434   :  { %v761_v13 = vpop.eup %760  ;;  %v435_v14 = vmul.f32 %v759_v11, %v743_v45 }
 0x435   :  { %690 = vmatmul.mubr.msk.bf16.vlgmr.msra.gmra.mrb[12].mxu0 %vm34_vm0, %v440_v12  ;;  %v436_v19 = vmul.f32 %v761_v13, %v745_v47 }
 0x437   :  { %v441_v22 = vpack.c.bf16 %v436_v19, %v435_v14 }
 0x439   :  { %693 = vmatprep.mubr.msk.bf16.mxu0 %vm34_vm0, %v441_v22 }
 0x43d   :  { %694 = vmatmul.mubr.msk.bf16.gmra.mrb[16].mxu0 %vm34_vm0, %v442_v26 }
 0x508   :  { %v691_v31 = vpop.f32.mrb[12].mxu0 }
 0x509   :  { %v528_v32 = vmul.f32 %v691_v31, %v976_v16  ;;  %v495_v33 = vpop.f32.mrb[13].mxu0 }
 0x50a   :  { %v526_v8 = vmul.f32 %v495_v33, %v955_v53  ;;  %v692_v34 = vpop.f32.mrb[14].mxu0 }
 0x50b   :  { %v529_v35 = vmul.f32 %v692_v34, %v981_v18  ;;  %v498_v9 = vpop.f32.mrb[15].mxu0 }
 0x50c   :  { %v534_v36 = vadd.f32 %v528_v32, %v526_v8  ;;  %v527_v37 = vmul.f32 %v498_v9, %v960_v54 }
 0x50e   :  { %v535_v38 = vadd.f32 %v529_v35, %v527_v37 }
 0x510   :  { %v695_v25 = vpop.f32.mrb[16].mxu0 }
 0x511   :  { %v511_v39 = vpop.f32.mrb[17].mxu0  ;;  %v532_v43 = vmul.f32 %v695_v25, %v1003_v27 }
 0x512   :  { %v530_v40 = vmul.f32 %v511_v39, %v988_v20  ;;  %v696_v41 = vpop.f32.mrb[18].mxu0 }
 0x513   :  { %v514_v42 = vpop.f32.mrb[19].mxu0  ;;  %v533_v45 = vmul.f32 %v696_v41, %v1008_v28 }
 0x514   :  { %v536_v16 = vadd.f32 %v534_v36, %v530_v40  ;;  %v531_v44 = vmul.f32 %v514_v42, %v993_v21 }
 0x516   :  { %v538_v53 = vadd.f32 %v536_v16, %v532_v43  ;;  %v537_v18 = vadd.f32 %v535_v38, %v531_v44 }
 0x518   :  { %v539_v46 = vadd.f32 %v537_v18, %v533_v45 }
 0x51a   :  { %v540_v47 = vpack.c.bf16 %v539_v46, %v538_v53 }
 0x51c   :  { %702 = vmatmul.mubr.msk.bf16.vlgmr.msra.gmra.mrb[8].mxu1 %vm34_vm0, %v540_v47 }
 0x5ef   :  { %v594_v54 = vpop.f32.mrb[8].mxu1 }
 0x5f0   :  { %v601_v20 = vadd.f32 %v594_v54, %v836_v0  ;;  %v703_v15 = vpop.f32.mrb[9].mxu1 }
 0x5f1   :  { %v597_v48 = vpop.f32.mrb[10].mxu1 }
 0x5f2   :  { %603 = vst.msk [vmem:[#allocation2] sm:$0xff] %vm34_vm0, %v601_v20  ;;  %v602_v27 = vadd.f32 %v597_v48, %v841_v1  ;;  %v704_v21 = vpop.f32.mrb[11].mxu1 }
 0x5f4   :  { %604 = vst.msk [vmem:[#allocation2 + $0x8] sm:$0xff] %vm34_vm0, %v602_v27 }
 0x5f5   :  { %773 = shalt.err (!%p770_p4)
}
 0x5f6   :  { %s774_s25 = scalar_lea.hbm %s1102_s7, 256 }
 0x5f7   :  { %p775_p5 = scmp.ne.s32.totalorder %s1102_s7, %s774_s25  ;;  %p778_p6 = scmp.lt.u32.totalorder %s774_s25, %s1102_s7 }
 0x5f9   :  { %p780_p7 = pnand %p778_p6, %p775_p5 }
 0x5fb   :  { %783 = shalt.err (!%p780_p7)
}
 0x5fc   :  { %s791_s30 = smov 128   ;;  %s792_s5 = smov 8  }
 0x5fd   :  { %616 = dma.vmem_to_hbm [thread:$0]  %s611_s21, 256, %s1102_s7, [#allocation3], %s791_s30, %s791_s30, %s792_s5  }
 0x5fe   :  { %784 = dma.done.wait [#allocation3], 256  }
 0x5ff   :  { %785 = vsyncadd [#allocation3], 4294967040 }
 0x600   :  { %620 = vsyncpa [#allocation3], 1 }

</bundles_post_ra>
